<compile_context>
chip_gen: v5e
topology: v5e:2x2
jax: 0.10.0
libtpu: 0.0.40
codegen_flags: <defaults>
</compile_context>

<pallas_src>
import math

import jax
import jax.numpy as jnp
from jax.experimental import pallas as pl
from jax.experimental.pallas import tpu as pltpu


# ---------------------------------------------------------------------------
# Hardware / sizing helpers
# ---------------------------------------------------------------------------

def _vmem_limit_bytes():
    """Scoped-VMEM limit: half the physical VMEM, capped at 64 MiB.
    (v5e/v6e: 128 MiB physical -> 64 MiB; v7x: 64 MiB physical -> 32 MiB.)"""
    cap = 128 * 1024 * 1024
    try:
        info = pltpu.get_tpu_info()
        cap = int(getattr(info, "vmem_capacity_bytes", cap))
    except Exception:
        pass
    return min(64 * 1024 * 1024, cap // 2)


def _divisors(n):
    ds = set()
    i = 1
    while i * i <= n:
        if n % i == 0:
            ds.add(i)
            ds.add(n // i)
        i += 1
    return sorted(ds)


def _pick_tile_rows(rows, per_row_bytes, fixed_bytes, budget, max_tile=4096):
    """Largest divisor of `rows` (<= max_tile) whose double-buffered working
    set (2 x per-row streams + fixed weight buffers) fits `budget`.
    Multiples of 8 preferred for sublane alignment."""
    divs = _divisors(rows)
    fitting = [d for d in divs
               if d <= max_tile and fixed_bytes + 2 * d * per_row_bytes <= budget]
    if not fitting:
        return 1
    mult8 = [d for d in fitting if d % 8 == 0]
    return max(mult8) if mult8 else max(fitting)


def _pick_fold(N, I, F, out_itemsize, weight_budget=2 * 1024 * 1024):
    """Fold factor G: G consecutive sequence rows are viewed as one row, so
    the output tile's last dim (G*F) is a multiple of 128 (unmasked stores)
    and, when the block-diagonal weight still fits, the input tile's last dim
    (G*I) is a multiple of 128 as well (lane-dense x loads, K=128 MXU)."""
    g_out = 128 // math.gcd(F, 128)                    # lane-dense output
    g_in = 128 // math.gcd(I, 128)                     # lane-dense input
    g_full = g_out * g_in // math.gcd(g_out, g_in)     # both
    for g in (g_full, g_out):
        if g < 1:
            continue
        w_bytes = (g * I) * (g * F) * 4
        n_pad = ((N + g - 1) // g) * g
        pad_ok = (
            n_pad == N
            or (n_pad - N) * 8 <= n_pad                     # <= 12.5% padded rows
            or n_pad * F * out_itemsize <= 8 * 1024 * 1024  # or padded output tiny
        )
        if w_bytes <= weight_budget and pad_ok:
            return g
    return 1


# ---------------------------------------------------------------------------
# Kernel
# ---------------------------------------------------------------------------

def _vit_input_kernel(pos_ref, x_ref, w_ref, o_ref):
    # pos_ref: (tr, G*F) f32  batch-invariant positional term (folded)
    # x_ref:   (tr, G*I)      input-feature tile (fold of G sequence rows)
    # w_ref:   (G*I, G*F)     block-diagonal output weight for the x part
    # o_ref:   (tr, G*F)      lane-dense output tile
    acc = jnp.dot(x_ref[...], w_ref[...], preferred_element_type=jnp.float32)
    o_ref[...] = (pos_ref[...] + acc).astype(o_ref.dtype)


# ---------------------------------------------------------------------------
# Wrapper
# ---------------------------------------------------------------------------

def positional_term(z, proj_w, proj_b, out_w, out_b):
    """Batch-invariant term pos = sin(z @ Wp^T + bp) @ We + bo, shape (N, F).
    Tiny (N x F) and fully fusable -> plain jnp, no kernel launch.  For
    inference this is a constant: compute once at init and pass via `pos=`."""
    E = proj_w.shape[0]
    we = out_w.T[:E].astype(jnp.float32)                        # (E, F)
    embed = jnp.sin(z.astype(jnp.float32) @ proj_w.T.astype(jnp.float32)
                    + proj_b.astype(jnp.float32))               # (N, E)
    return embed @ we + out_b.astype(jnp.float32)               # (N, F)


def vit_input_forward(x, z, proj_w, proj_b, out_w, out_b, *,
                      out_dtype=None, pos=None):
    """x: (B, N, I). z: (N, 2) normalized coords (batch-independent buffer).

    proj_w: (E, 2), proj_b: (E,)   -- FourierEmbedding Linear(2, E)
    out_w:  (F, E+I), out_b: (F,)  -- output Linear(E+I, F)
    out_dtype: optional narrower output dtype (e.g. jnp.bfloat16) to halve the
               dominant output HBM stream; accumulation stays f32.
    pos: optional precomputed positional term (N, F) f32.
    Returns (B, N, F) in out_dtype (default: x.dtype).
    """
    B, N, I = x.shape
    E = proj_w.shape[0]
    F = out_w.shape[0]
    out_dtype = jnp.dtype(x.dtype if out_dtype is None else out_dtype)

    if pos is None:
        pos = positional_term(z, proj_w, proj_b, out_w, out_b)   # (N, F) f32
    wx = out_w.T[E:].astype(x.dtype)                             # (I, F)

    # ---- lane-dense fold of the sequence axis (pad N if needed) -----------
    G = _pick_fold(N, I, F, out_dtype.itemsize)
    N_pad = ((N + G - 1) // G) * G
    if N_pad != N:
        x = jnp.pad(x, ((0, 0), (0, N_pad - N), (0, 0)))
        pos = jnp.pad(pos, ((0, N_pad - N), (0, 0)))
    GI, GF = G * I, G * F
    rows = N_pad // G

    if G > 1:
        # block-diagonal weight: w_bd[g*I+i, h*F+f] = (g == h) * wx[i, f]
        eye = jnp.eye(G, dtype=wx.dtype)
        w_bd = (eye[:, None, :, None] * wx[None, :, None, :]).reshape(GI, GF)
    else:
        w_bd = wx

    # ---- tile the flattened (B * rows) axis --------------------------------
    x_itemsize = jnp.dtype(x.dtype).itemsize
    per_row_bytes = GI * x_itemsize + GF * 4 + GF * out_dtype.itemsize
    fixed_bytes = 2 * GI * GF * jnp.dtype(w_bd.dtype).itemsize
    vmem_limit = _vmem_limit_bytes()
    tile_rows = _pick_tile_rows(rows, per_row_bytes, fixed_bytes,
                                budget=(vmem_limit * 3) // 4)

    n_tiles_per_batch = rows // tile_rows
    total_tiles = B * n_tiles_per_batch
    if total_tiles < 2 and rows > 1:
        # guarantee >= 2 grid steps so v7x megacore can shard the parallel axis
        tile_rows = max(d for d in _divisors(rows) if d < rows)
        n_tiles_per_batch = rows // tile_rows
        total_tiles = B * n_tiles_per_batch

    # Free row-major reshapes: tile index is the only "grid" dimension, so the
    # block's middle dim always equals the full array dim (layout-safe for any
    # tile_rows) and the last dims are GI / GF (multiples of 128 when folded).
    x_t = x.reshape(B, rows, GI).reshape(total_tiles, tile_rows, GI)
    pos_t = pos.reshape(rows, GF).reshape(n_tiles_per_batch, tile_rows, GF)

    if n_tiles_per_batch == 1:
        pos_map = lambda i: (0, 0, 0)                  # resident across all steps
    else:
        pos_map = lambda i: (i % n_tiles_per_batch, 0, 0)  # re-fetched once/batch

    out_t = pl.pallas_call(
        _vit_input_kernel,
        out_shape=jax.ShapeDtypeStruct((total_tiles, tile_rows, GF), out_dtype),
        grid_spec=pltpu.PrefetchScalarGridSpec(
            num_scalar_prefetch=0,
            grid=(total_tiles,),
            in_specs=[
                pl.BlockSpec((None, tile_rows, GF), pos_map),
                pl.BlockSpec((None, tile_rows, GI), lambda i: (i, 0, 0)),
                pl.BlockSpec((GI, GF), lambda i: (0, 0)),   # fetched once
            ],
            out_specs=pl.BlockSpec((None, tile_rows, GF), lambda i: (i, 0, 0)),
        ),
        compiler_params=pltpu.CompilerParams(
            dimension_semantics=("parallel",),
            vmem_limit_bytes=vmem_limit,
        ),
    )(pos_t, x_t, w_bd)

    out = out_t.reshape(B, N_pad, F)
    if N_pad != N:
        out = out[:, :N, :]
    return out


# ---------------------------------------------------------------------------
# Module plumbing + self-test
# ---------------------------------------------------------------------------

def make_position_coords(height, width):
    """Replicates ViTInput.__init__'s meshgrid + FourierEmbedding normalization."""
    xs = jnp.arange(width, dtype=jnp.float32)
    ys = jnp.arange(height, dtype=jnp.float32)
    xg, yg = jnp.meshgrid(xs, ys, indexing="ij")   # x-major, like torch.meshgrid
    x_flat = xg.reshape(-1)
    y_flat = yg.reshape(-1)
    wd = float(max(width - 1, 1))                  # guard width/height == 1
    hd = float(max(height - 1, 1))
    x_norm = 2.0 * x_flat / wd - 1.0
    y_norm = 2.0 * y_flat / hd - 1.0
    return jnp.stack([x_norm, y_norm], axis=-1)    # (N, 2) ordered as (x, y)


def reference_forward(x, z, proj_w, proj_b, out_w, out_b):
    embed = jnp.sin(z @ proj_w.T + proj_b)                         # (N, E)
    embed = jnp.broadcast_to(embed[None], (x.shape[0],) + embed.shape)
    result = jnp.concatenate([embed, x], axis=2)                   # (B, N, E+I)
    return result @ out_w.T + out_b                                # (B, N, F)


if __name__ == "__main__":
    # Small shapes consistent with the module:
    #   input_features=4, embed_features=8, features=32, height=4, width=4
    batch = 2
    height, width = 4, 4
    input_features = 4
    embed_features = 8
    features = 32
    seq = height * width

    key = jax.random.PRNGKey(0)
    k_x, k_pw, k_pb, k_ow, k_ob = jax.random.split(key, 5)

    x = jax.random.normal(k_x, (batch, seq, input_features), dtype=jnp.float32)
    proj_w = 0.5 * jax.random.normal(k_pw, (embed_features, 2), dtype=jnp.float32)
    proj_b = 0.1 * jax.random.normal(k_pb, (embed_features,), dtype=jnp.float32)
    out_w = 0.1 * jax.random.normal(
        k_ow, (features, embed_features + input_features), dtype=jnp.float32
    )
    out_b = 0.1 * jax.random.normal(k_ob, (features,), dtype=jnp.float32)

    z = make_position_coords(height, width)
    ref = reference_forward(x, z, proj_w, proj_b, out_w, out_b)

    # Exact f32 path (default out_dtype = x.dtype).
    out = vit_input_forward(x, z, proj_w, proj_b, out_w, out_b)
    out = jax.block_until_ready(out)
    assert out.shape == (batch, seq, features)
    assert jnp.allclose(out, ref, atol=1e-5, rtol=1e-5), "mismatch vs reference"

    # Optional narrow-output path (halves the dominant output HBM stream).
    out_bf16 = vit_input_forward(x, z, proj_w, proj_b, out_w, out_b,
                                 out_dtype=jnp.bfloat16)
    out_bf16 = jax.block_until_ready(out_bf16)
    assert out_bf16.shape == (batch, seq, features)
    assert jnp.allclose(out_bf16.astype(jnp.float32), ref, atol=5e-2, rtol=5e-2), \
        "bf16-output mismatch vs reference"

    print("KERNEL_OK")
</pallas_src>

<mosaic_0001>
module attributes {stable_mosaic.version = 11 : i64} {
  func.func @_vit_input_kernel(%arg0: i32, %arg1: memref<1x1x1024xf32, #tpu.memory_space<vmem>>, %arg2: memref<1x1x128xf32, #tpu.memory_space<vmem>>, %arg3: memref<128x1024xf32, #tpu.memory_space<vmem>>, %arg4: memref<1x1x1024xf32, #tpu.memory_space<vmem>>) attributes {dimension_semantics = [#tpu.dimension_semantics<parallel>], iteration_bounds = array<i64: 2>, scalar_prefetch = 0 : i64, scratch_operands = 0 : i64, tpu.core_type = #tpu.core_type<tc>, window_params = [{pipeline_mode = #tpu.pipeline_mode<synchronous>, transform_indices = @transform_0, window_bounds = array<i64: 1, 1, 1024>}, {transform_indices = @transform_1, window_bounds = array<i64: 1, 1, 128>}, {pipeline_mode = #tpu.pipeline_mode<synchronous>, transform_indices = @transform_2, window_bounds = array<i64: 128, 1024>}, {transform_indices = @transform_3, window_bounds = array<i64: 1, 1, 1024>}]} {
    %c0 = arith.constant 0 : index
    %c0_0 = arith.constant 0 : index
    %c0_1 = arith.constant 0 : index
    %0 = vector.load %arg2[%c0, %c0_0, %c0_1] : memref<1x1x128xf32, #tpu.memory_space<vmem>>, vector<1x1x128xf32>
    %1 = vector.shape_cast %0 : vector<1x1x128xf32> to vector<1x128xf32>
    %c0_2 = arith.constant 0 : index
    %c0_3 = arith.constant 0 : index
    %2 = vector.load %arg3[%c0_2, %c0_3] : memref<128x1024xf32, #tpu.memory_space<vmem>>, vector<128x1024xf32>
    %cst = arith.constant dense<0.000000e+00> : vector<1x1024xf32>
    %3 = tpu.matmul %1, %2, %cst {dimension_numbers = #tpu.dot_dimension_numbers<[1], [0], [0], [1], [0, 0, 1, 1], [], []>} : vector<1x128xf32>, vector<128x1024xf32>, vector<1x1024xf32> -> vector<1x1024xf32>
    %c0_4 = arith.constant 0 : index
    %c0_5 = arith.constant 0 : index
    %c0_6 = arith.constant 0 : index
    %4 = vector.load %arg1[%c0_4, %c0_5, %c0_6] : memref<1x1x1024xf32, #tpu.memory_space<vmem>>, vector<1x1x1024xf32>
    %5 = vector.shape_cast %4 : vector<1x1x1024xf32> to vector<1x1024xf32>
    %6 = arith.addf %5, %3 : vector<1x1024xf32>
    %c0_7 = arith.constant 0 : index
    %c0_8 = arith.constant 0 : index
    %c0_9 = arith.constant 0 : index
    %7 = vector.load %arg4[%c0_7, %c0_8, %c0_9] : memref<1x1x1024xf32, #tpu.memory_space<vmem>>, vector<1x1x1024xf32>
    %8 = vector.shape_cast %7 : vector<1x1x1024xf32> to vector<1x1024xf32>
    %9 = vector.shape_cast %6 : vector<1x1024xf32> to vector<1x1x1024xf32>
    tpu.vector_store %arg4[%c0_7, %c0_8, %c0_9], %9 {strides = array<i32>} : memref<1x1x1024xf32, #tpu.memory_space<vmem>>, vector<1x1x1024xf32>,
    return
  }
  func.func @transform_0(%arg0: i32) -> (i32, i32, i32) {
    %c0_i32 = arith.constant 0 : i32
    %c0_i32_0 = arith.constant 0 : i32
    %c0_i32_1 = arith.constant 0 : i32
    %c0_i32_2 = arith.constant 0 : i32
    return %c0_i32, %c0_i32_0, %c0_i32_1 : i32, i32, i32
  }
  func.func @transform_1(%arg0: i32) -> (i32, i32, i32) {
    %c0_i32 = arith.constant 0 : i32
    %c0_i32_0 = arith.constant 0 : i32
    %c0_i32_1 = arith.constant 0 : i32
    return %arg0, %c0_i32, %c0_i32_0 : i32, i32, i32
  }
  func.func @transform_2(%arg0: i32) -> (i32, i32) {
    %c0_i32 = arith.constant 0 : i32
    %c0_i32_0 = arith.constant 0 : i32
    %c0_i32_1 = arith.constant 0 : i32
    return %c0_i32, %c0_i32_0 : i32, i32
  }
  func.func @transform_3(%arg0: i32) -> (i32, i32, i32) {
    %c0_i32 = arith.constant 0 : i32
    %c0_i32_0 = arith.constant 0 : i32
    %c0_i32_1 = arith.constant 0 : i32
    return %arg0, %c0_i32, %c0_i32_0 : i32, i32, i32
  }
}

</mosaic_0001>

<bundles_post_ra>
// kernel: tpu_custom_call.1
= control target key start
LH: loop header
LB: loop body
LE: loop exit
PB: predicated region body
PF: predicated region fallthrough
CT: control target
= control target key end

     0   :  { %8 = vsyncpa [#allocation3], 0  ;;  %s1070_s0 = inlined_call_operand.hbm [shape: f32[1,1,1024], index: 0, kind: input, shape index: {}]   ;;  %s1071_s1 = inlined_call_operand.hbm [shape: f32[2,1,128], index: 1, kind: input, shape index: {}]   ;;  %s1072_s2 = inlined_call_operand.hbm [shape: f32[128,1024], index: 2, kind: input, shape index: {}]   ;;  %s1073_s3 = inlined_call_operand.hbm [shape: f32[2,1,1024], index: 3, kind: output, shape index: {}]  }
   0x1   :  { %9 = vsyncpa [#allocation6], 0 }
   0x2   :  { %11 = vsyncpa [#allocation6 + $0x1], 0 }
   0x3   :  { %12 = vsyncpa [#allocation4], 0 }
   0x4   :  { %14 = vsyncpa [#allocation4 + $0x1], 0  ;;  %s912_s12 = smov 0   ;;  %s914_s13 = smov 0  }
   0x5   :  { %s916_s14 = smov 0   ;;  %s918_s15 = smov 0  }
   0x6 LB: > { %s142_s18 = sshll.u32 %s1072_s2, 4  ;;  %s936_s19 = sadd.s32 4294967295, %s886_s15   ;;  %s886_s15 = sphi %s918_s15, %s1083_s15   ;;  %s882_s14 = sphi %s916_s14, %s1082_s14   ;;  %s878_s13 = sphi %s914_s13, %s1081_s13   ;;  %s874_s12 = sphi %s912_s12, %s1080_s12   ;;  %s143_s18 = int_to_ptr.hbm [resolvable:$true] %s142_s18 }
   0x7   : > { %p641_p0 = scmp.ge.s32.totalorder %s886_s15, 1  ;;  %p62_p1 = scmp.eq.s32.totalorder %s936_s19, 0 }
   0x8   : > { %p119_p2 = scmp.lt.s32.totalorder %s886_s15, 3  ;;  %s888_s21 = smov [#allocation7]  }
   0x9   : > { %s144_s22 = sshll.u32 %s888_s21, 4  ;;  %s131_s25 = sshll.u32 %s1070_s0, 4  ;;  %s145_s22 = int_to_ptr.vmem [resolvable:$true] %s144_s22  ;;  %s132_s25 = int_to_ptr.hbm [resolvable:$true] %s131_s25 }
   0xa   : > { %p941_p3 = pnand %p641_p0, %p119_p2  ;;  %s889_s26 = smov [#allocation2]  }
   0xb   : > { %s133_s27 = sshll.u32 %s889_s26, 4  ;;  %s890_s28 = smov 1024   ;;  %s134_s27 = int_to_ptr.vmem [resolvable:$true] %s133_s27 }
   0xc   : > { %p665_p4 = pneg %p941_p3  ;;  %s891_s29 = smov 64  }
   0xd   : > { %s640_s30 = sadd.s32 4294967294, %s886_s15   ;;  %s955_s4 = sadd.s32 1, %s886_s15  }
   0xe   : > { %p666_p6 = pnand %p665_p4, %p62_p1  ;;  %s45_s5 = ssub.s32 %s886_s15, %s955_s4 }
   0xf   : > { %s48_s6 = sadd.s32 1, %s882_s14  ;;  %p46_p7 = scmp.eq.s32.totalorder %s45_s5, 0 }
  0x10   : > { %671 = dma.hbm_to_vmem [thread:$0]  (!%p666_p6), %s143_s18, 16384, %s145_s22, [#allocation6], %s890_s28, %s890_s28, %s891_s29  }
  0x11   : > { %668 = dma.hbm_to_vmem [thread:$0]  (!%p666_p6), %s132_s25, 128, %s134_s27, [#allocation3]  }
  0x12   : > { %p55_p8 = scmp.ne.s32.totalorder %s882_s14, %s878_s13  ;;  %p56_p9 = scmp.eq.s32.totalorder %s886_s15, 0 }
  0x13   : > { %p61_p10 = scmp.ne.s32.totalorder %s878_s13, %s874_s12  ;;  %p106_p12 = scmp.eq.s32.totalorder %s936_s19, 1 }
  0x14   : > { %s966_s7 = scalar_select %p46_p7, %s882_s14, %s48_s6  }
  0x15   : > { %p970_p11 = por %p62_p1, %p61_p10  ;;  %p112_p13 = scmp.eq.s32.totalorder %s640_s30, 1 }
  0x16   : > { %p57_p0 = por %p56_p9, %p55_p8  ;;  %p682_p2 = scmp.lt.s32.totalorder %s886_s15, 2 }
  0x17   : > { %p976_p4 = por %p106_p12, %p55_p8  ;;  %p980_p6 = por %p112_p13, %p61_p10 }
  0x18   : > { %s158_s11 = sand.u32 1, %s886_s15   ;;  %s160_s16 = sand.u32 1, %s882_s14  }
  0x19   : > { %s164_s21 = scalar_lea.hbm %s1071_s1, %s886_s15  ;;  %s161_s23 = scalar_lea.vmem [#allocation5], %s160_s16 }
  0x1a   : > { %s166_s22 = sshll.u32 %s164_s21, 4  ;;  %s168_s24 = sshll.u32 %s161_s23, 4  ;;  %s167_s22 = int_to_ptr.hbm [resolvable:$true] %s166_s22  ;;  %s169_s24 = int_to_ptr.vmem [resolvable:$true] %s168_s24 }
  0x1b   : > { %p990_p7 = pnand %p682_p2, %p57_p0  ;;  %s159_s26 = scalar_lea.sflag [#allocation6], %s158_s11 }
  0x1c   : > { %s782_s27 = sshra.s32 %s167_s22, 4  ;;  %s789_s5 = scalar_lea.hbm %s1071_s1, 2  ;;  %s783_s27 = int_to_ptr.hbm [resolvable:$true] %s782_s27 }
  0x1d   : > { %s784_s28 = scalar_lea.hbm %s783_s27, 1  ;;  %p786_p9 = pneg %p990_p7 }
  0x1e   : > { %p785_p8 = scmp.ne.s32.totalorder %s783_s27, %s784_s28  ;;  %p790_p13 = scmp.lt.s32.totalorder %s783_s27, %s1071_s1 }
  0x1f   : > { %p791_p0 = scmp.lt.s32.totalorder %s789_s5, %s784_s28 }
  0x20   : > { %p787_p10 = pnand %p786_p9, %p785_p8 }
  0x21   : > { %p792_p2 = por %p791_p0, %p790_p13 }
  0x22   : > { %p788_p12 = pneg %p787_p10 }
  0x24   : > { %p793_p5 = pnand %p792_p2, %p788_p12 }
  0x26   : > { %796 = shalt.err (!%p793_p5)
}
  0x27   : > { %675 = dma.hbm_to_vmem [thread:$0]  (!%p990_p7), %s167_s22, 16, %s169_s24, %s159_s26  }
  0x28   : > { %177 = sbr.rel (%p941_p3) target bundleno = 258 (0x102), region = 32 }
  0x2d   : > { %857 = dma.done.wait (%p62_p1), [#allocation3], 128  }
  0x2e   : > { %859 = vsyncadd (%p62_p1), [#allocation3], 4294967168  ;;  %s184_s11 = sand.u32 1, %s936_s19   ;;  %s1012_s17 = sand.u32 1, %s878_s13  }
  0x2f   : > { %s185_s18 = scalar_lea.sflag [#allocation6], %s184_s11  ;;  %s187_s21 = scalar_lea.vmem [#allocation5], %s1012_s17 }
  0x30   : > { %861 = dma.done.wait (%p970_p11), %s185_s18, 16  }
  0x31   : > { %863 = vsyncadd (%p970_p11), %s185_s18, 4294967280 }
  0x32   : > { %865 = dma.done.wait (%p62_p1), [#allocation6], 16384  }
  0x33   : > { %867 = vsyncadd (%p62_p1), [#allocation6], 4294950912  ;;  %v338_v0 = vld [vmem:[#allocation7 + $0x3d0] sm:$0xff]  ;;  %v339_v1 = vld [vmem:[#allocation7 + $0x3d8] sm:$0xff]  ;;  %s648_s20 = sshll.u32 %s1012_s17, 3  ;;  %s650_s8 = sshll.u32 %s936_s19, 3 }
  0x34   : > { %v330_v2 = vld [vmem:[#allocation7 + $0x390] sm:$0xff]  ;;  %384 = vmatpush.msra.mxu2 %v338_v0  ;;  %404 = vmatpush.msra.mxu3 %v339_v1  ;;  %v331_v3 = vld [vmem:[#allocation7 + $0x398] sm:$0xff]  ;;  %v336_v6 = vld [vmem:[#allocation7 + $0x3c0] sm:$0xff]  ;;  %vm522_vm0 = vcmask 1042434   ;;  %vm520_vm1 = vcmask 1040384   ;;  %vm524_vm2 = vcmask 1041408   ;;  %s548_s24 = scalar_lea.hbm %s1073_s3, %s650_s8 }
  0x35   : > { %v322_v4 = vld [vmem:[#allocation7 + $0x350] sm:$0xff]  ;;  %v323_v5 = vld [vmem:[#allocation7 + $0x358] sm:$0xff]  ;;  %v337_v7 = vld [vmem:[#allocation7 + $0x3c8] sm:$0xff]  ;;  %344 = vmatpush.msra.mxu0 %v336_v6  ;;  %vm526_vm3 = vcmask 1044484   ;;  %vm528_vm4 = vcmask 1046534   ;;  %vm530_vm5 = vcmask 1045508  }
  0x36   : > { %385 = vmatpush.msra.mxu2 %v330_v2  ;;  %405 = vmatpush.msra.mxu3 %v331_v3  ;;  %v328_v8 = vld [vmem:[#allocation7 + $0x380] sm:$0xff]  ;;  %v329_v9 = vld [vmem:[#allocation7 + $0x388] sm:$0xff]  ;;  %v314_v10 = vld [vmem:[#allocation7 + $0x310] sm:$0xff]  ;;  %vm532_vm6 = vcmask 1043456   ;;  %s214_s19 = scalar_lea.vmem [#allocation8], %s648_s20  ;;  %s552_s26 = sshll.u32 %s548_s24, 4  ;;  %s553_s26 = int_to_ptr.hbm [resolvable:$true] %s552_s26 }
  0x37   : > { %364 = vmatpush.msra.mxu1 %v337_v7  ;;  %v315_v11 = vld [vmem:[#allocation7 + $0x318] sm:$0xff]  ;;  %v320_v12 = vld [vmem:[#allocation7 + $0x340] sm:$0xff]  ;;  %v321_v13 = vld [vmem:[#allocation7 + $0x348] sm:$0xff]  ;;  %345 = vmatpush.msra.mxu0 %v328_v8  ;;  %s550_s25 = sshll.u32 %s214_s19, 4  ;;  %s538_s27 = scalar_lea.sflag [#allocation4], %s1012_s17  ;;  %s551_s25 = int_to_ptr.vmem [resolvable:$true] %s550_s25 }
  0x38   : > { %386 = vmatpush.msra.mxu2 %v322_v4  ;;  %406 = vmatpush.msra.mxu3 %v323_v5  ;;  %v306_v14 = vld [vmem:[#allocation7 + $0x2d0] sm:$0xff]  ;;  %v307_v15 = vld [vmem:[#allocation7 + $0x2d8] sm:$0xff]  ;;  %v312_v16 = vld [vmem:[#allocation7 + $0x300] sm:$0xff]  ;;  %s826_s28 = sshra.s32 %s553_s26, 4  ;;  %s832_s6 = scalar_lea.hbm %s1073_s3, 16  ;;  %s827_s28 = int_to_ptr.hbm [resolvable:$true] %s826_s28 }
  0x39   : > { %365 = vmatpush.msra.mxu1 %v329_v9  ;;  %v313_v17 = vld [vmem:[#allocation7 + $0x308] sm:$0xff]  ;;  %346 = vmatpush.msra.mxu0 %v320_v12  ;;  %v298_v18 = vld [vmem:[#allocation7 + $0x290] sm:$0xff]  ;;  %v299_v19 = vld [vmem:[#allocation7 + $0x298] sm:$0xff]  ;;  %s828_s29 = scalar_lea.hbm %s827_s28, 8  ;;  %p833_p11 = scmp.lt.s32.totalorder %s827_s28, %s1073_s3 }
  0x3a   : > { %387 = vmatpush.msra.mxu2 %v314_v10  ;;  %407 = vmatpush.msra.mxu3 %v315_v11  ;;  %v304_v20 = vld [vmem:[#allocation7 + $0x2c0] sm:$0xff]  ;;  %v305_v21 = vld [vmem:[#allocation7 + $0x2c8] sm:$0xff]  ;;  %v290_v22 = vld [vmem:[#allocation7 + $0x250] sm:$0xff]  ;;  %p829_p1 = scmp.ne.s32.totalorder %s827_s28, %s828_s29  ;;  %p834_p7 = scmp.lt.s32.totalorder %s832_s6, %s828_s29 }
  0x3b   : > { %366 = vmatpush.msra.mxu1 %v321_v13  ;;  %347 = vmatpush.msra.mxu0 %v312_v16  ;;  %v291_v23 = vld [vmem:[#allocation7 + $0x258] sm:$0xff]  ;;  %v296_v24 = vld [vmem:[#allocation7 + $0x280] sm:$0xff]  ;;  %v297_v25 = vld [vmem:[#allocation7 + $0x288] sm:$0xff] }
  0x3c   : > { %388 = vmatpush.msra.mxu2 %v306_v14  ;;  %408 = vmatpush.msra.mxu3 %v307_v15  ;;  %v282_v26 = vld [vmem:[#allocation7 + $0x210] sm:$0xff]  ;;  %v283_v27 = vld [vmem:[#allocation7 + $0x218] sm:$0xff]  ;;  %v288_v28 = vld [vmem:[#allocation7 + $0x240] sm:$0xff]  ;;  %p830_p3 = pnand %p829_p1, %p976_p4  ;;  %p835_p8 = por %p834_p7, %p833_p11 }
  0x3d   : > { %367 = vmatpush.msra.mxu1 %v313_v17  ;;  %348 = vmatpush.msra.mxu0 %v304_v20  ;;  %v289_v29 = vld [vmem:[#allocation7 + $0x248] sm:$0xff]  ;;  %v274_v30 = vld [vmem:[#allocation7 + $0x1d0] sm:$0xff]  ;;  %v275_v31 = vld [vmem:[#allocation7 + $0x1d8] sm:$0xff] }
  0x3e   : > { %389 = vmatpush.msra.mxu2 %v298_v18  ;;  %409 = vmatpush.msra.mxu3 %v299_v19  ;;  %v280_v32 = vld [vmem:[#allocation7 + $0x200] sm:$0xff]  ;;  %v281_v33 = vld [vmem:[#allocation7 + $0x208] sm:$0xff]  ;;  %v266_v34 = vld [vmem:[#allocation7 + $0x190] sm:$0xff]  ;;  %p831_p5 = pneg %p830_p3 }
  0x3f   : > { %368 = vmatpush.msra.mxu1 %v305_v21  ;;  %349 = vmatpush.msra.mxu0 %v296_v24  ;;  %v267_v35 = vld [vmem:[#allocation7 + $0x198] sm:$0xff]  ;;  %v272_v36 = vld [vmem:[#allocation7 + $0x1c0] sm:$0xff]  ;;  %v273_v37 = vld [vmem:[#allocation7 + $0x1c8] sm:$0xff] }
  0x40   : > { %390 = vmatpush.msra.mxu2 %v290_v22  ;;  %410 = vmatpush.msra.mxu3 %v291_v23  ;;  %v258_v38 = vld [vmem:[#allocation7 + $0x150] sm:$0xff]  ;;  %v259_v39 = vld [vmem:[#allocation7 + $0x158] sm:$0xff]  ;;  %v264_v40 = vld [vmem:[#allocation7 + $0x180] sm:$0xff]  ;;  %p836_p9 = pnand %p835_p8, %p831_p5 }
  0x41   : > { %369 = vmatpush.msra.mxu1 %v297_v25  ;;  %350 = vmatpush.msra.mxu0 %v288_v28  ;;  %v265_v41 = vld [vmem:[#allocation7 + $0x188] sm:$0xff]  ;;  %v250_v42 = vld [vmem:[#allocation7 + $0x110] sm:$0xff]  ;;  %v251_v43 = vld [vmem:[#allocation7 + $0x118] sm:$0xff] }
  0x42   : > { %391 = vmatpush.msra.mxu2 %v282_v26  ;;  %411 = vmatpush.msra.mxu3 %v283_v27  ;;  %v256_v44 = vld [vmem:[#allocation7 + $0x140] sm:$0xff]  ;;  %v257_v45 = vld [vmem:[#allocation7 + $0x148] sm:$0xff]  ;;  %v242_v46 = vld [vmem:[#allocation7 + $0xd0] sm:$0xff] }
  0x43   : > { %370 = vmatpush.msra.mxu1 %v289_v29  ;;  %351 = vmatpush.msra.mxu0 %v280_v32  ;;  %v243_v47 = vld [vmem:[#allocation7 + $0xd8] sm:$0xff]  ;;  %v248_v48 = vld [vmem:[#allocation7 + $0x100] sm:$0xff]  ;;  %v249_v49 = vld [vmem:[#allocation7 + $0x108] sm:$0xff] }
  0x44   : > { %392 = vmatpush.msra.mxu2 %v274_v30  ;;  %412 = vmatpush.msra.mxu3 %v275_v31  ;;  %v234_v50 = vld [vmem:[#allocation7 + $0x90] sm:$0xff]  ;;  %v235_v51 = vld [vmem:[#allocation7 + $0x98] sm:$0xff]  ;;  %v240_v52 = vld [vmem:[#allocation7 + $0xc0] sm:$0xff] }
  0x45   : > { %371 = vmatpush.msra.mxu1 %v281_v33  ;;  %352 = vmatpush.msra.mxu0 %v272_v36  ;;  %v241_v53 = vld [vmem:[#allocation7 + $0xc8] sm:$0xff]  ;;  %v226_v54 = vld [vmem:[#allocation7 + $0x50] sm:$0xff]  ;;  %v227_v55 = vld [vmem:[#allocation7 + $0x58] sm:$0xff] }
  0x46   : > { %393 = vmatpush.msra.mxu2 %v266_v34  ;;  %413 = vmatpush.msra.mxu3 %v267_v35  ;;  %v232_v56 = vld [vmem:[#allocation7 + $0x80] sm:$0xff]  ;;  %v233_v57 = vld [vmem:[#allocation7 + $0x88] sm:$0xff]  ;;  %v218_v58 = vld [vmem:[#allocation7 + $0x10] sm:$0xff] }
  0x47   : > { %372 = vmatpush.msra.mxu1 %v273_v37  ;;  %353 = vmatpush.msra.mxu0 %v264_v40  ;;  %v219_v59 = vld [vmem:[#allocation7 + $0x18] sm:$0xff]  ;;  %v342_v60 = vld [vmem:[#allocation7 + $0x3f0] sm:$0xff]  ;;  %v224_v62 = vld [vmem:[#allocation7 + $0x40] sm:$0xff] }
  0x48   : > { %394 = vmatpush.msra.mxu2 %v258_v38  ;;  %414 = vmatpush.msra.mxu3 %v259_v39  ;;  %v343_v61 = vld [vmem:[#allocation7 + $0x3f8] sm:$0xff]  ;;  %v225_v63 = vld [vmem:[#allocation7 + $0x48] sm:$0xff]  ;;  %v334_v0 = vld [vmem:[#allocation7 + $0x3b0] sm:$0xff] }
  0x49   : > { %373 = vmatpush.msra.mxu1 %v265_v41  ;;  %354 = vmatpush.msra.mxu0 %v256_v44  ;;  %v335_v1 = vld [vmem:[#allocation7 + $0x3b8] sm:$0xff]  ;;  %v216_v2 = vld [vmem:[#allocation7] sm:$0xff]  ;;  %v217_v3 = vld [vmem:[#allocation7 + $0x8] sm:$0xff] }
  0x4a   : > { %395 = vmatpush.msra.mxu2 %v250_v42  ;;  %415 = vmatpush.msra.mxu3 %v251_v43  ;;  %v326_v4 = vld [vmem:[#allocation7 + $0x370] sm:$0xff]  ;;  %v327_v5 = vld [vmem:[#allocation7 + $0x378] sm:$0xff]  ;;  %v340_v6 = vld [vmem:[#allocation7 + $0x3e0] sm:$0xff] }
  0x4b   : > { %374 = vmatpush.msra.mxu1 %v257_v45  ;;  %355 = vmatpush.msra.mxu0 %v248_v48  ;;  %v341_v7 = vld [vmem:[#allocation7 + $0x3e8] sm:$0xff]  ;;  %v318_v8 = vld [vmem:[#allocation7 + $0x330] sm:$0xff]  ;;  %v319_v9 = vld [vmem:[#allocation7 + $0x338] sm:$0xff] }
  0x4c   : > { %396 = vmatpush.msra.mxu2 %v242_v46  ;;  %416 = vmatpush.msra.mxu3 %v243_v47  ;;  %v332_v10 = vld [vmem:[#allocation7 + $0x3a0] sm:$0xff]  ;;  %v333_v11 = vld [vmem:[#allocation7 + $0x3a8] sm:$0xff]  ;;  %v310_v12 = vld [vmem:[#allocation7 + $0x2f0] sm:$0xff] }
  0x4d   : > { %375 = vmatpush.msra.mxu1 %v249_v49  ;;  %356 = vmatpush.msra.mxu0 %v240_v52  ;;  %v311_v13 = vld [vmem:[#allocation7 + $0x2f8] sm:$0xff]  ;;  %v324_v14 = vld [vmem:[#allocation7 + $0x360] sm:$0xff]  ;;  %v325_v15 = vld [vmem:[#allocation7 + $0x368] sm:$0xff] }
  0x4e   : > { %397 = vmatpush.msra.mxu2 %v234_v50  ;;  %417 = vmatpush.msra.mxu3 %v235_v51  ;;  %v302_v16 = vld [vmem:[#allocation7 + $0x2b0] sm:$0xff]  ;;  %v303_v17 = vld [vmem:[#allocation7 + $0x2b8] sm:$0xff]  ;;  %v316_v18 = vld [vmem:[#allocation7 + $0x320] sm:$0xff] }
  0x4f   : > { %376 = vmatpush.msra.mxu1 %v241_v53  ;;  %357 = vmatpush.msra.mxu0 %v232_v56  ;;  %v317_v19 = vld [vmem:[#allocation7 + $0x328] sm:$0xff]  ;;  %v294_v20 = vld [vmem:[#allocation7 + $0x270] sm:$0xff]  ;;  %v295_v21 = vld [vmem:[#allocation7 + $0x278] sm:$0xff] }
  0x50   : > { %398 = vmatpush.msra.mxu2 %v226_v54  ;;  %418 = vmatpush.msra.mxu3 %v227_v55  ;;  %v308_v22 = vld [vmem:[#allocation7 + $0x2e0] sm:$0xff]  ;;  %v309_v23 = vld [vmem:[#allocation7 + $0x2e8] sm:$0xff]  ;;  %v286_v24 = vld [vmem:[#allocation7 + $0x230] sm:$0xff] }
  0x51   : > { %377 = vmatpush.msra.mxu1 %v233_v57  ;;  %358 = vmatpush.msra.mxu0 %v224_v62  ;;  %v287_v25 = vld [vmem:[#allocation7 + $0x238] sm:$0xff]  ;;  %v300_v26 = vld [vmem:[#allocation7 + $0x2a0] sm:$0xff]  ;;  %v301_v27 = vld [vmem:[#allocation7 + $0x2a8] sm:$0xff] }
  0x52   : > { %399 = vmatpush.msra.mxu2 %v218_v58  ;;  %419 = vmatpush.msra.mxu3 %v219_v59  ;;  %v278_v28 = vld [vmem:[#allocation7 + $0x1f0] sm:$0xff]  ;;  %v279_v29 = vld [vmem:[#allocation7 + $0x1f8] sm:$0xff]  ;;  %v292_v30 = vld [vmem:[#allocation7 + $0x260] sm:$0xff] }
  0x53   : > { %378 = vmatpush.msra.mxu1 %v225_v63  ;;  %359 = vmatpush.msra.mxu0 %v216_v2  ;;  %v293_v31 = vld [vmem:[#allocation7 + $0x268] sm:$0xff]  ;;  %v270_v32 = vld [vmem:[#allocation7 + $0x1b0] sm:$0xff]  ;;  %v271_v33 = vld [vmem:[#allocation7 + $0x1b8] sm:$0xff] }
  0x54   : > { %464 = vmatpush.msrb.mxu2 %v342_v60  ;;  %484 = vmatpush.msrb.mxu3 %v343_v61  ;;  %v284_v34 = vld [vmem:[#allocation7 + $0x220] sm:$0xff]  ;;  %v285_v35 = vld [vmem:[#allocation7 + $0x228] sm:$0xff]  ;;  %v262_v36 = vld [vmem:[#allocation7 + $0x170] sm:$0xff] }
  0x55   : > { %379 = vmatpush.msra.mxu1 %v217_v3  ;;  %424 = vmatpush.msrb.mxu0 %v340_v6  ;;  %v263_v37 = vld [vmem:[#allocation7 + $0x178] sm:$0xff]  ;;  %v1025_v38 = vld [vmem:[%s187_s21] sm:$0x1]  ;;  %v276_v39 = vld [vmem:[#allocation7 + $0x1e0] sm:$0xff] }
  0x56   : > { %465 = vmatpush.msrb.mxu2 %v334_v0  ;;  %485 = vmatpush.msrb.mxu3 %v335_v1  ;;  %v277_v40 = vld [vmem:[#allocation7 + $0x1e8] sm:$0xff]  ;;  %v254_v41 = vld [vmem:[#allocation7 + $0x130] sm:$0xff]  ;;  %v255_v42 = vld [vmem:[#allocation7 + $0x138] sm:$0xff] }
  0x57   : > { %444 = vmatpush.msrb.mxu1 %v341_v7  ;;  %425 = vmatpush.msrb.mxu0 %v332_v10  ;;  %v268_v43 = vld [vmem:[#allocation7 + $0x1a0] sm:$0xff]  ;;  %v269_v44 = vld [vmem:[#allocation7 + $0x1a8] sm:$0xff]  ;;  %v246_v45 = vld [vmem:[#allocation7 + $0xf0] sm:$0xff] }
  0x58   : > { %466 = vmatpush.msrb.mxu2 %v326_v4  ;;  %486 = vmatpush.msrb.mxu3 %v327_v5  ;;  %v247_v46 = vld [vmem:[#allocation7 + $0xf8] sm:$0xff]  ;;  %v260_v47 = vld [vmem:[#allocation7 + $0x160] sm:$0xff]  ;;  %v261_v48 = vld [vmem:[#allocation7 + $0x168] sm:$0xff] }
  0x59   : > { %445 = vmatpush.msrb.mxu1 %v333_v11  ;;  %426 = vmatpush.msrb.mxu0 %v324_v14  ;;  %v238_v49 = vld [vmem:[#allocation7 + $0xb0] sm:$0xff]  ;;  %v239_v50 = vld [vmem:[#allocation7 + $0xb8] sm:$0xff]  ;;  %v252_v51 = vld [vmem:[#allocation7 + $0x120] sm:$0xff] }
  0x5a   : > { %467 = vmatpush.msrb.mxu2 %v318_v8  ;;  %487 = vmatpush.msrb.mxu3 %v319_v9  ;;  %v253_v52 = vld [vmem:[#allocation7 + $0x128] sm:$0xff]  ;;  %v230_v53 = vld [vmem:[#allocation7 + $0x70] sm:$0xff]  ;;  %v231_v54 = vld [vmem:[#allocation7 + $0x78] sm:$0xff] }
  0x5b   : > { %446 = vmatpush.msrb.mxu1 %v325_v15  ;;  %427 = vmatpush.msrb.mxu0 %v316_v18  ;;  %v244_v55 = vld [vmem:[#allocation7 + $0xe0] sm:$0xff]  ;;  %v245_v56 = vld [vmem:[#allocation7 + $0xe8] sm:$0xff]  ;;  %v222_v57 = vld [vmem:[#allocation7 + $0x30] sm:$0xff] }
  0x5c   : > { %468 = vmatpush.msrb.mxu2 %v310_v12  ;;  %488 = vmatpush.msrb.mxu3 %v311_v13  ;;  %v223_v58 = vld [vmem:[#allocation7 + $0x38] sm:$0xff]  ;;  %v236_v59 = vld [vmem:[#allocation7 + $0xa0] sm:$0xff]  ;;  %v237_v60 = vld [vmem:[#allocation7 + $0xa8] sm:$0xff] }
  0x5d   : > { %447 = vmatpush.msrb.mxu1 %v317_v19  ;;  %428 = vmatpush.msrb.mxu0 %v308_v22  ;;  %v228_v61 = vld [vmem:[#allocation7 + $0x60] sm:$0xff]  ;;  %v229_v62 = vld [vmem:[#allocation7 + $0x68] sm:$0xff]  ;;  %v504_v19 = vld [vmem:[#allocation2] sm:$0xff] }
  0x5e   : > { %469 = vmatpush.msrb.mxu2 %v302_v16  ;;  %489 = vmatpush.msrb.mxu3 %v303_v17  ;;  %v220_v63 = vld [vmem:[#allocation7 + $0x20] sm:$0xff]  ;;  %v221_v0 = vld [vmem:[#allocation7 + $0x28] sm:$0xff] }
  0x5f   : > { %448 = vmatpush.msrb.mxu1 %v309_v23  ;;  %429 = vmatpush.msrb.mxu0 %v300_v26 }
  0x60   : > { %470 = vmatpush.msrb.mxu2 %v294_v20  ;;  %490 = vmatpush.msrb.mxu3 %v295_v21 }
  0x61   : > { %449 = vmatpush.msrb.mxu1 %v301_v27  ;;  %430 = vmatpush.msrb.mxu0 %v292_v30 }
  0x62   : > { %471 = vmatpush.msrb.mxu2 %v286_v24  ;;  %491 = vmatpush.msrb.mxu3 %v287_v25 }
  0x63   : > { %450 = vmatpush.msrb.mxu1 %v293_v31  ;;  %431 = vmatpush.msrb.mxu0 %v284_v34 }
  0x64   : > { %472 = vmatpush.msrb.mxu2 %v278_v28  ;;  %492 = vmatpush.msrb.mxu3 %v279_v29 }
  0x65   : > { %451 = vmatpush.msrb.mxu1 %v285_v35  ;;  %400 = vmatmul.f32.vlgmr.msra.gmra.mxu2 %v1025_v38 }
  0x66   : > { %473 = vmatpush.msrb.mxu2 %v270_v32  ;;  %493 = vmatpush.msrb.mxu3 %v271_v33 }
  0x67   : > { %420 = vmatmul.f32.vlgmr.msra.gmra.mxu3 %v1025_v38  ;;  %432 = vmatpush.msrb.mxu0 %v276_v39 }
  0x68   : > { %474 = vmatpush.msrb.mxu2 %v262_v36  ;;  %494 = vmatpush.msrb.mxu3 %v263_v37 }
  0x69   : > { %452 = vmatpush.msrb.mxu1 %v277_v40  ;;  %433 = vmatpush.msrb.mxu0 %v268_v43 }
  0x6a   : > { %475 = vmatpush.msrb.mxu2 %v254_v41  ;;  %495 = vmatpush.msrb.mxu3 %v255_v42 }
  0x6b   : > { %453 = vmatpush.msrb.mxu1 %v269_v44  ;;  %434 = vmatpush.msrb.mxu0 %v260_v47 }
  0x6c   : > { %476 = vmatpush.msrb.mxu2 %v246_v45  ;;  %496 = vmatpush.msrb.mxu3 %v247_v46 }
  0x6d   : > { %454 = vmatpush.msrb.mxu1 %v261_v48  ;;  %435 = vmatpush.msrb.mxu0 %v252_v51 }
  0x6e   : > { %477 = vmatpush.msrb.mxu2 %v238_v49  ;;  %497 = vmatpush.msrb.mxu3 %v239_v50 }
  0x6f   : > { %380 = vmatmul.f32.vlgmr.msra.gmra.mxu1 %v1025_v38  ;;  %360 = vmatmul.f32.vlgmr.msra.gmra.mxu0 %v1025_v38 }
  0x70   : > { %455 = vmatpush.msrb.mxu1 %v253_v52  ;;  %478 = vmatpush.msrb.mxu2 %v230_v53 }
  0x71   : > { %498 = vmatpush.msrb.mxu3 %v231_v54  ;;  %436 = vmatpush.msrb.mxu0 %v244_v55 }
  0x72   : > { %456 = vmatpush.msrb.mxu1 %v245_v56  ;;  %479 = vmatpush.msrb.mxu2 %v222_v57 }
  0x73   : > { %499 = vmatpush.msrb.mxu3 %v223_v58  ;;  %480 = vmatmul.f32.vlgmr.msrb.gmra.mxu2 %v1025_v38 }
  0x74   : > { %500 = vmatmul.f32.vlgmr.msrb.gmra.mxu3 %v1025_v38  ;;  %437 = vmatpush.msrb.mxu0 %v236_v59 }
  0x75   : > { %457 = vmatpush.msrb.mxu1 %v237_v60 }
  0x76   : > { %438 = vmatpush.msrb.mxu0 %v228_v61 }
  0x77   : > { %458 = vmatpush.msrb.mxu1 %v229_v62 }
  0x78   : > { %439 = vmatpush.msrb.mxu0 %v220_v63 }
  0x79   : > { %459 = vmatpush.msrb.mxu1 %v221_v0  ;;  %440 = vmatmul.f32.vlgmr.msrb.gmra.mxu0 %v1025_v38 }
  0x7a   : > { %460 = vmatmul.f32.vlgmr.msrb.gmra.mxu1 %v1025_v38 }
  0xe8   : > { %v401_v3 = vpop.f32.mrf.mxu2 }
  0xe9   : > { %v514_v6 = vrot.slane %v401_v3, 6 }
  0xea   : > { %v421_v4 = vpop.f32.mrf.mxu3 }
  0xeb   : > { %v515_v7 = vrot.slane %v421_v4, 5 }
  0xec   : > { %v361_v1 = vpop.f32.mrf.mxu0  ;;  %v381_v2 = vpop.f32.mrf.mxu1 }
  0xed   : > { %v513_v5 = vrot.slane %v381_v2, 7  ;;  %v523_v14 = vsel %vm522_vm0, %v514_v6, %v515_v7 }
  0xef   : > { %v521_v15 = vsel %vm520_vm1, %v361_v1, %v513_v5 }
  0xf0   : > { %v525_v21 = vsel %vm524_vm2, %v521_v15, %v523_v14 }
  0xf6   : > { %v441_v8 = vpop.f32.mrf.mxu0  ;;  %v481_v12 = vpop.f32.mrf.mxu2 }
  0xf7   : > { %v461_v9 = vpop.f32.mrf.mxu1  ;;  %v516_v10 = vrot.slane %v441_v8, 4  ;;  %v501_v13 = vpop.f32.mrf.mxu3  ;;  %v518_v16 = vrot.slane %v481_v12, 2 }
  0xf8   : > { %v517_v11 = vrot.slane %v461_v9, 3  ;;  %v519_v17 = vrot.slane %v501_v13, 1 }
  0xfa   : > { %v527_v18 = vsel %vm526_vm3, %v516_v10, %v517_v11  ;;  %v529_v20 = vsel %vm528_vm4, %v518_v16, %v519_v17 }
  0xfb   : > { %v531_v22 = vsel %vm530_vm5, %v527_v18, %v529_v20 }
  0xfc   : > { %v533_v23 = vsel %vm532_vm6, %v525_v21, %v531_v22 }
  0xfd   : > { %v535_v24 = vadd.f32 %v533_v23, %v504_v19 }
  0xff   : > { %536 = vst [vmem:[%s214_s19] sm:$0xff] %v535_v24 }
 0x100   : > { %839 = shalt.err (!%p836_p9)
}
 0x101   : > { %663 = dma.vmem_to_hbm [thread:$0]  (%p976_p4), %s551_s25, 128, %s553_s26, %s538_s27  }
 0x102 PF: > { %s564_s17 = sand.u32 1, %s874_s12   ;;  %p1079_p10 = scmp.ge.s32.totalorder %s886_s15, 2 }
 0x103   : > { %s565_s18 = scalar_lea.sflag [#allocation4], %s564_s17 }
 0x104   : > { %p677_p12 = pnand %p1079_p10, %p980_p6 }
 0x106   : > { %p678_p13 = pneg %p677_p12 }
 0x108   : > { %869 = dma.done.wait (%p678_p13), %s565_s18, 128  }
 0x109   : > { %871 = vsyncadd (%p678_p13), %s565_s18, 4294967168  ;;  %p17_p0 = scmp.ge.s32.totalorder %s955_s4, 4   ;;  %s1080_s12 = smov %s878_s13 }
 0x10a   : > { %s1081_s13 = smov %s882_s14  ;;  %s1082_s14 = smov %s966_s7 }
 0x10b   : > { %s1083_s15 = smov %s955_s4  ;;  %19 = sbr.rel (!%p17_p0) target bundleno = 6 (0x6), region = 86 }
 0x110   :  { %571 = vsyncpa [#allocation3], 1 }
 0x111   :  { %573 = vsyncpa [#allocation3 + $0x1], 1 }
 0x112   :  { %574 = vsyncpa [#allocation6], 1 }
 0x113   :  { %576 = vsyncpa [#allocation6 + $0x1], 1 }
 0x114   :  { %577 = vsyncpa [#allocation4], 1 }
 0x115   :  { %579 = vsyncpa [#allocation4 + $0x1], 1 }

</bundles_post_ra>
